<compile_context>
chip_gen: v6e
topology: v6e:2x2x1
jax: 0.10.0
libtpu: 0.0.40
codegen_flags: <defaults>
</compile_context>

<pallas_src>
import functools

import jax
import jax.numpy as jnp
from jax.experimental import pallas as pl
from jax.experimental.pallas import tpu as pltpu
from jax.scipy.linalg import block_diag

_HIDDEN = 256

# Best-effort per-generation defaults (string sniff; harmless if no match).
try:
    _KIND = jax.devices()[0].device_kind.lower()
except Exception:  # pragma: no cover
    _KIND = ""
_IS_V5 = "v5" in _KIND
_MIN_GRID_DEFAULT = 2 if "v7" in _KIND else 1   # v7x: 2 TensorCores / chip


def _mlp_kernel(x_ref, w1_ref, b1_ref, w2_ref, b2_ref, o_ref):
    # h = relu(x @ W1 + b1); o = h @ W2 + b2  — f32 accumulation on the MXU.
    h = jnp.dot(x_ref[...], w1_ref[...], preferred_element_type=jnp.float32)
    if b1_ref.dtype != jnp.float32:
        # bf16 epilogue (v6e/v7x native bf16 VALU): cast once, then bias+ReLU
        # at half vreg width.  Accumulation above stayed in f32.
        h = h.astype(b1_ref.dtype)
    h = jnp.maximum(h + b1_ref[...], 0.0)
    h = h.astype(w2_ref.dtype)
    o = jnp.dot(h, w2_ref[...], preferred_element_type=jnp.float32)
    o_ref[...] = (o + b2_ref[...]).astype(o_ref.dtype)


def _pick_pack(input_dim, batch):
    """Batch-into-lanes factor P so that K = P*input_dim == 128 (MXU fill)."""
    if input_dim >= 128 or 128 % input_dim != 0:
        return 1
    p = min(128 // input_dim, 16)          # keep block-diag weights small
    while p > 1 and batch % p != 0:
        p //= 2
    return max(p, 1)


def _pick_block_rows(batch, pack, max_rows, min_grid):
    """Rows (of the original batch) per grid step; must divide `batch`."""
    if min_grid <= 1 and batch <= max_rows:
        return batch                       # single step: no pointless split
    step = 8 * pack                        # packed sublane dim must be %8
    upper = min(max_rows, batch // max(min_grid, 1))
    upper = (upper // step) * step
    bb = upper
    while bb >= step:
        if batch % bb == 0:
            return bb
        bb -= step
    return batch                           # nothing divides cleanly: one step


def _vmem_bytes(block_rows, pack, d, h, o, act_isz, out_isz, b1_isz):
    """Conservative VMEM footprint incl. (8,128) padding, double buffering and
    the f32 hidden activation (+ its low-precision copy)."""
    lp = lambda n: -(-n // 128) * 128
    sp = lambda n: -(-n // 8) * 8
    rows = sp(block_rows // pack)
    dp, hp, op = pack * d, pack * h, pack * o
    x_buf = 2 * rows * lp(dp) * act_isz                    # streamed x
    o_buf = 2 * rows * lp(op) * out_isz                    # streamed out
    w_buf = 2 * (sp(dp) * lp(hp) + sp(hp) * lp(op)) * act_isz
    b_buf = 2 * 8 * (lp(hp) * b1_isz + lp(op) * 4)
    hid = rows * lp(hp) * (4 + act_isz)                    # f32 dot result + cast
    return x_buf + o_buf + w_buf + b_buf + hid


@functools.partial(
    jax.jit,
    static_argnames=("block_rows", "compute_dtype", "max_block_rows",
                     "min_grid_steps", "low_precision_epilogue"))
def value_network_forward(x, w1, b1, w2, b2, *, block_rows=None,
                          compute_dtype=jnp.bfloat16, max_block_rows=8192,
                          min_grid_steps=None, low_precision_epilogue=None):
    """x: [B, D]; w1: [D, 256]; b1: [256]; w2: [256, O]; b2: [O] -> [B, O]."""
    B, D = x.shape
    H = w1.shape[1]
    O = w2.shape[1]
    out_dtype = x.dtype

    if min_grid_steps is None:
        min_grid_steps = _MIN_GRID_DEFAULT
    if low_precision_epilogue is None:
        low_precision_epilogue = not _IS_V5          # v5e has no bf16 VALU

    cd = jnp.dtype(compute_dtype)
    act_isz = cd.itemsize
    out_isz = jnp.dtype(out_dtype).itemsize
    bias1_dtype = cd if (low_precision_epilogue and cd != jnp.float32) else jnp.float32
    b1_isz = jnp.dtype(bias1_dtype).itemsize

    # ---- batch-into-lanes packing factor -------------------------------
    P = _pick_pack(D, B)
    assert B % P == 0

    # ---- block size / grid ----------------------------------------------
    if block_rows is None:
        soft_cap = 22 << 20
        mr = max_block_rows
        while True:
            bb = _pick_block_rows(B, P, mr, min_grid_steps)
            est = _vmem_bytes(bb, P, D, H, O, act_isz, out_isz, b1_isz)
            if est <= soft_cap or mr <= 8 * P or bb <= 8 * P:
                break
            mr = max(8 * P, mr // 2)
        block_rows = bb
    assert B % block_rows == 0, f"block_rows={block_rows} must divide B={B}"
    assert block_rows % P == 0
    rows_p = block_rows // P
    grid_n = B // block_rows
    if grid_n > 1:
        assert rows_p % 8 == 0, (
            f"block_rows={block_rows} must be a multiple of {8 * P} when grid > 1")

    # ---- operand prep (row-major reshapes are free; block-diag weights are
    #      small constants: P copies of W on the diagonal) -----------------
    xc = x.astype(cd).reshape(B // P, P * D)
    if P > 1:
        w1p = block_diag(*([w1.astype(cd)] * P))          # [P*D, P*H]
        w2p = block_diag(*([w2.astype(cd)] * P))          # [P*H, P*O]
        b1p = jnp.tile(b1, P)
        b2p = jnp.tile(b2, P)
    else:
        w1p, w2p, b1p, b2p = w1.astype(cd), w2.astype(cd), b1, b2
    b1p = b1p.astype(bias1_dtype).reshape(1, P * H)
    b2p = b2p.astype(jnp.float32).reshape(1, P * O)

    est = _vmem_bytes(block_rows, P, D, H, O, act_isz, out_isz, b1_isz)
    vmem_limit = int(min(max(2 * est, 8 << 20), 48 << 20))

    cost = pl.CostEstimate(
        flops=2 * (B // P) * (P * D) * (P * H) + 2 * (B // P) * (P * H) * (P * O),
        transcendentals=0,
        bytes_accessed=(xc.size * act_isz + w1p.size * act_isz
                        + w2p.size * act_isz + b1p.size * b1_isz
                        + b2p.size * 4 + (B // P) * (P * O) * out_isz),
    )

    out_p = pl.pallas_call(
        _mlp_kernel,
        out_shape=jax.ShapeDtypeStruct((B // P, P * O), out_dtype),
        grid_spec=pltpu.PrefetchScalarGridSpec(
            num_scalar_prefetch=0,
            grid=(grid_n,),
            in_specs=[
                pl.BlockSpec((rows_p, P * D), lambda i: (i, 0)),   # x (streamed)
                pl.BlockSpec((P * D, P * H), lambda i: (0, 0)),    # W1 (resident)
                pl.BlockSpec((1, P * H), lambda i: (0, 0)),        # b1
                pl.BlockSpec((P * H, P * O), lambda i: (0, 0)),    # W2 (resident)
                pl.BlockSpec((1, P * O), lambda i: (0, 0)),        # b2
            ],
            out_specs=pl.BlockSpec((rows_p, P * O), lambda i: (i, 0)),
        ),
        compiler_params=pltpu.CompilerParams(
            dimension_semantics=("parallel",),   # megacore shard on v7x
            vmem_limit_bytes=vmem_limit,
        ),
        cost_estimate=cost,
    )(xc, w1p, b1p, w2p, b2p)
    return out_p.reshape(B, O)


def init_params(key, input_dim, output_dim, hidden=_HIDDEN, dtype=jnp.float32):
    """Mirrors nn.Linear's U(-1/sqrt(fan_in), 1/sqrt(fan_in)); weights are
    returned already transposed to [in, out]."""
    k1, k2, k3, k4 = jax.random.split(key, 4)
    lim1 = 1.0 / jnp.sqrt(jnp.array(input_dim, dtype))
    lim2 = 1.0 / jnp.sqrt(jnp.array(hidden, dtype))
    w1 = jax.random.uniform(k1, (input_dim, hidden), dtype, -lim1, lim1)
    b1 = jax.random.uniform(k2, (hidden,), dtype, -lim1, lim1)
    w2 = jax.random.uniform(k3, (hidden, output_dim), dtype, -lim2, lim2)
    b2 = jax.random.uniform(k4, (output_dim,), dtype, -lim2, lim2)
    return w1, b1, w2, b2


def _ref_forward(x, w1, b1, w2, b2, compute_dtype, epilogue_dtype=jnp.float32):
    cd, ep = compute_dtype, epilogue_dtype
    h = jnp.dot(x.astype(cd), w1.astype(cd), preferred_element_type=jnp.float32)
    h = jnp.maximum(h.astype(ep) + b1.astype(ep), 0).astype(cd)
    o = jnp.dot(h, w2.astype(cd), preferred_element_type=jnp.float32)
    o = o + b2.astype(jnp.float32)
    return o.astype(x.dtype)


if __name__ == "__main__":
    key = jax.random.PRNGKey(0)
    kp, kx1, kx2, kx3 = jax.random.split(key, 4)

    input_dim, output_dim = 32, 4
    w1, b1, w2, b2 = init_params(kp, input_dim, output_dim)
    ep_bf16 = jnp.bfloat16 if not _IS_V5 else jnp.float32

    # 1) Small batch, f32 compute path (packed P=4, single grid step).
    x1 = jax.random.normal(kx1, (8, input_dim), jnp.float32)
    out1 = jax.block_until_ready(
        value_network_forward(x1, w1, b1, w2, b2, compute_dtype=jnp.float32))
    ref1 = _ref_forward(x1, w1, b1, w2, b2, jnp.float32)
    assert out1.shape == (8, output_dim)
    assert jnp.allclose(out1, ref1, atol=1e-4, rtol=1e-4)

    # 2) Default bf16 compute path, single (or megacore-split) grid.
    x2 = jax.random.normal(kx2, (64, input_dim), jnp.float32)
    out2 = jax.block_until_ready(value_network_forward(x2, w1, b1, w2, b2))
    ref2 = _ref_forward(x2, w1, b1, w2, b2, jnp.bfloat16, ep_bf16)
    assert out2.shape == (64, output_dim)
    assert jnp.allclose(out2, ref2, atol=3e-2, rtol=3e-2)

    # 3) Multi-step pipelined grid (explicit small block to exercise it).
    x3 = jax.random.normal(kx3, (256, input_dim), jnp.float32)
    out3 = jax.block_until_ready(
        value_network_forward(x3, w1, b1, w2, b2, block_rows=128))
    ref3 = _ref_forward(x3, w1, b1, w2, b2, jnp.bfloat16, ep_bf16)
    assert out3.shape == (256, output_dim)
    assert jnp.allclose(out3, ref3, atol=3e-2, rtol=3e-2)

    # 4) Unpacked fallback (input_dim that does not divide 128).
    w1b, b1b, w2b, b2b = init_params(kp, 48, output_dim)
    x4 = jax.random.normal(kx1, (16, 48), jnp.float32)
    out4 = jax.block_until_ready(
        value_network_forward(x4, w1b, b1b, w2b, b2b, compute_dtype=jnp.float32))
    ref4 = _ref_forward(x4, w1b, b1b, w2b, b2b, jnp.float32)
    assert out4.shape == (16, output_dim)
    assert jnp.allclose(out4, ref4, atol=1e-4, rtol=1e-4)

    print("KERNEL_OK")
</pallas_src>

<mosaic_0001>
module attributes {stable_mosaic.version = 11 : i64} {
  func.func @_mlp_kernel(%arg0: i32, %arg1: memref<2x128xf32, #tpu.memory_space<vmem>>, %arg2: memref<128x1024xf32, #tpu.memory_space<vmem>>, %arg3: memref<1x1024xf32, #tpu.memory_space<vmem>>, %arg4: memref<1024x16xf32, #tpu.memory_space<vmem>>, %arg5: memref<1x16xf32, #tpu.memory_space<vmem>>, %arg6: memref<2x16xf32, #tpu.memory_space<vmem>>) attributes {dimension_semantics = [#tpu.dimension_semantics<parallel>], iteration_bounds = array<i64: 1>, scalar_prefetch = 0 : i64, scratch_operands = 0 : i64, tpu.core_type = #tpu.core_type<tc>, window_params = [{transform_indices = @transform_0, window_bounds = array<i64: 2, 128>}, {pipeline_mode = #tpu.pipeline_mode<synchronous>, transform_indices = @transform_1, window_bounds = array<i64: 128, 1024>}, {pipeline_mode = #tpu.pipeline_mode<synchronous>, transform_indices = @transform_2, window_bounds = array<i64: 1, 1024>}, {pipeline_mode = #tpu.pipeline_mode<synchronous>, transform_indices = @transform_3, window_bounds = array<i64: 1024, 16>}, {pipeline_mode = #tpu.pipeline_mode<synchronous>, transform_indices = @transform_4, window_bounds = array<i64: 1, 16>}, {transform_indices = @transform_5, window_bounds = array<i64: 2, 16>}]} {
    %c0 = arith.constant 0 : index
    %c0_0 = arith.constant 0 : index
    %0 = vector.load %arg1[%c0, %c0_0] : memref<2x128xf32, #tpu.memory_space<vmem>>, vector<2x128xf32>
    %c0_1 = arith.constant 0 : index
    %c0_2 = arith.constant 0 : index
    %1 = vector.load %arg2[%c0_1, %c0_2] : memref<128x1024xf32, #tpu.memory_space<vmem>>, vector<128x1024xf32>
    %cst = arith.constant dense<0.000000e+00> : vector<2x1024xf32>
    %2 = tpu.matmul %0, %1, %cst {dimension_numbers = #tpu.dot_dimension_numbers<[1], [0], [0], [1], [0, 0, 1, 1], [], []>} : vector<2x128xf32>, vector<128x1024xf32>, vector<2x1024xf32> -> vector<2x1024xf32>
    %c0_3 = arith.constant 0 : index
    %c0_4 = arith.constant 0 : index
    %3 = vector.load %arg3[%c0_3, %c0_4] : memref<1x1024xf32, #tpu.memory_space<vmem>>, vector<1x1024xf32>
    %4 = vector.broadcast %3 : vector<1x1024xf32> to vector<2x1024xf32>
    %5 = arith.addf %2, %4 : vector<2x1024xf32>
    %cst_5 = arith.constant 0.000000e+00 : f32
    %6 = vector.broadcast %cst_5 : f32 to vector<2x1024xf32>
    %7 = arith.maximumf %5, %6 : vector<2x1024xf32>
    %c0_6 = arith.constant 0 : index
    %c0_7 = arith.constant 0 : index
    %8 = vector.load %arg4[%c0_6, %c0_7] : memref<1024x16xf32, #tpu.memory_space<vmem>>, vector<1024x16xf32>
    %cst_8 = arith.constant dense<0.000000e+00> : vector<2x16xf32>
    %9 = tpu.matmul %7, %8, %cst_8 {dimension_numbers = #tpu.dot_dimension_numbers<[1], [0], [0], [1], [0, 0, 1, 1], [], []>} : vector<2x1024xf32>, vector<1024x16xf32>, vector<2x16xf32> -> vector<2x16xf32>
    %c0_9 = arith.constant 0 : index
    %c0_10 = arith.constant 0 : index
    %10 = vector.load %arg5[%c0_9, %c0_10] : memref<1x16xf32, #tpu.memory_space<vmem>>, vector<1x16xf32>
    %11 = vector.broadcast %10 : vector<1x16xf32> to vector<2x16xf32>
    %12 = arith.addf %9, %11 : vector<2x16xf32>
    %c0_11 = arith.constant 0 : index
    %c0_12 = arith.constant 0 : index
    %13 = vector.load %arg6[%c0_11, %c0_12] : memref<2x16xf32, #tpu.memory_space<vmem>>, vector<2x16xf32>
    tpu.vector_store %arg6[%c0_11, %c0_12], %12 {strides = array<i32>} : memref<2x16xf32, #tpu.memory_space<vmem>>, vector<2x16xf32>,
    return
  }
  func.func @transform_0(%arg0: i32) -> (i32, i32) {
    %c0_i32 = arith.constant 0 : i32
    %c0_i32_0 = arith.constant 0 : i32
    return %arg0, %c0_i32 : i32, i32
  }
  func.func @transform_1(%arg0: i32) -> (i32, i32) {
    %c0_i32 = arith.constant 0 : i32
    %c0_i32_0 = arith.constant 0 : i32
    %c0_i32_1 = arith.constant 0 : i32
    return %c0_i32, %c0_i32_0 : i32, i32
  }
  func.func @transform_2(%arg0: i32) -> (i32, i32) {
    %c0_i32 = arith.constant 0 : i32
    %c0_i32_0 = arith.constant 0 : i32
    %c0_i32_1 = arith.constant 0 : i32
    return %c0_i32, %c0_i32_0 : i32, i32
  }
  func.func @transform_3(%arg0: i32) -> (i32, i32) {
    %c0_i32 = arith.constant 0 : i32
    %c0_i32_0 = arith.constant 0 : i32
    %c0_i32_1 = arith.constant 0 : i32
    return %c0_i32, %c0_i32_0 : i32, i32
  }
  func.func @transform_4(%arg0: i32) -> (i32, i32) {
    %c0_i32 = arith.constant 0 : i32
    %c0_i32_0 = arith.constant 0 : i32
    %c0_i32_1 = arith.constant 0 : i32
    return %c0_i32, %c0_i32_0 : i32, i32
  }
  func.func @transform_5(%arg0: i32) -> (i32, i32) {
    %c0_i32 = arith.constant 0 : i32
    %c0_i32_0 = arith.constant 0 : i32
    return %arg0, %c0_i32 : i32, i32
  }
}

</mosaic_0001>

<bundles_post_ra>
// kernel: tile.17
= control target key start
LH: loop header
LB: loop body
LE: loop exit
PB: predicated region body
PF: predicated region fallthrough
CT: control target
= control target key end

     0   :  { %s22_s0 = inlined_call_operand.vmem [shape: f32[4], index: 0, kind: input, shape index: {}]   ;;  %s23_s1 = inlined_call_operand.vmem [shape: f32[4,4], index: 1, kind: output, shape index: {}]  }
   0x1   :  { %v4_v0 = vld [vmem:[%s22_s0] ss:$0 sm:$0xff] }
   0x2   :  { %5 = vst [vmem:[%s23_s1] sm:$0xf] %v4_v0 }

// kernel: tile.19
= control target key start
LH: loop header
LB: loop body
LE: loop exit
PB: predicated region body
PF: predicated region fallthrough
CT: control target
= control target key end

     0   :  { %vm8_vm0 = vcmask 31744   ;;  %s40_s8 = smov 4   ;;  %s41_s9 = smov 8   ;;  %vm14_vm1 = vcmask 130144   ;;  %vm20_vm2 = vcmask 97344   ;;  %vm26_vm3 = vcmask 64544   ;;  %s58_s0 = inlined_call_operand.vmem [shape: f32[4,4], index: 0, kind: input, shape index: {}]   ;;  %s59_s1 = inlined_call_operand.vmem [shape: f32[1,16], index: 1, kind: output, shape index: {}]  }
   0x1   :  { %v5_v0 = vld [vmem:[%s58_s0] sm:$0xf]  ;;  %s39_s0 = smov 12  }
   0x2   :  { %6 = vst [vmem:[#allocation1] sm:$0xf] %v5_v0 }
   0x9   :  { %v11_v1 = vld [vmem:[#allocation1 + $0x3] sm:$0x1]   ;;  %v23_v2 = vld [vmem:[#allocation1 + $0x1] sm:$0x1]   ;;  %v7_v3 = vld [vmem:[#allocation1] sm:$0x1]  }
   0xa   :  { %12 = vrot.lane.b32.xlu0 %v11_v1, %s39_s0  ;;  %24 = vrot.lane.b32.xlu1 %v23_v2, %s40_s8  ;;  %v17_v4 = vld [vmem:[#allocation1 + $0x2] sm:$0x1]   ;;  %9 = vst.msk [vmem:[#allocation0] sm:$0x1] %vm8_vm0, %v7_v3  }
   0xe   :  { %18 = vrot.lane.b32.xlu0 %v17_v4, %s41_s9 }
  0x7c   :  { %v13_v5 = vpop.permute.xlu0 %12   ;;  %v25_v6 = vpop.permute.xlu1 %24  }
  0x7d   :  { %15 = vst.msk [vmem:[#allocation0] sm:$0x1] %vm14_vm1, %v13_v5  }
  0x80   :  { %v19_v7 = vpop.permute.xlu0 %18  }
  0x81   :  { %21 = vst.msk [vmem:[#allocation0] sm:$0x1] %vm20_vm2, %v19_v7  }
  0x82   :  { %27 = vst.msk [vmem:[#allocation0] sm:$0x1] %vm26_vm3, %v25_v6  }
  0x89   :  { %v32_v8 = vld [vmem:[#allocation0] sm:$0x1] }
  0x8a   :  { %35 = vst [vmem:[%s59_s1] sm:$0x1] %v32_v8 }

// kernel: value_network_forward.1
= control target key start
LH: loop header
LB: loop body
LE: loop exit
PB: predicated region body
PF: predicated region fallthrough
CT: control target
= control target key end

     0   :  { %v1046_v3 = vmov 0.0   ;;  %vm898_vm0 = vcmask 123904   ;;  %s1887_s1 = inlined_call_operand.vmem [shape: f32[128,1024], index: 1, kind: input, shape index: {}]   ;;  %s1888_s0 = inlined_call_operand.vmem [shape: f32[2,128], index: 0, kind: input, shape index: {}]   ;;  %s1889_s3 = inlined_call_operand.vmem [shape: f32[1024,16], index: 3, kind: input, shape index: {}]   ;;  %s1890_s2 = inlined_call_operand.vmem [shape: f32[1,1024], index: 2, kind: input, shape index: {}]   ;;  %s1891_s4 = inlined_call_operand.vmem [shape: f32[1,16], index: 4, kind: input, shape index: {}]   ;;  %s1892_s5 = inlined_call_operand.vmem [shape: f32[2,16], index: 5, kind: output, shape index: {}]  }
   0x1   :  { %v142_v0 = vld [vmem:[%s1887_s1 + $0x3c8] sm:$0xff]  ;;  %v144_v1 = vld [vmem:[%s1887_s1 + $0x3d8] sm:$0xff]  ;;  %v141_v2 = vld [vmem:[%s1887_s1 + $0x3c0] sm:$0xff]  ;;  %255 = vmatprep.mubr.f32.mxu0 %v1046_v3  ;;  %326 = vmatprep.mubr.f32.mxu1 %v1046_v3 }
   0x2   :  { %191 = vmatprep.subr.mxu0 %v142_v0  ;;  %262 = vmatprep.subr.mxu1 %v144_v1  ;;  %v143_v4 = vld [vmem:[%s1887_s1 + $0x3d0] sm:$0xff]  ;;  %v134_v5 = vld [vmem:[%s1887_s1 + $0x388] sm:$0xff]  ;;  %v136_v6 = vld [vmem:[%s1887_s1 + $0x398] sm:$0xff] }
   0x3   :  { %192 = vmatpush1.msra.mxu0 %v141_v2  ;;  %263 = vmatpush1.msra.mxu1 %v143_v4  ;;  %v133_v7 = vld [vmem:[%s1887_s1 + $0x380] sm:$0xff]  ;;  %v135_v8 = vld [vmem:[%s1887_s1 + $0x390] sm:$0xff]  ;;  %v126_v9 = vld [vmem:[%s1887_s1 + $0x348] sm:$0xff] }
   0x4   :  { %193 = vmatprep.subr.mxu0 %v134_v5  ;;  %264 = vmatprep.subr.mxu1 %v136_v6  ;;  %v128_v10 = vld [vmem:[%s1887_s1 + $0x358] sm:$0xff]  ;;  %v125_v11 = vld [vmem:[%s1887_s1 + $0x340] sm:$0xff]  ;;  %v127_v12 = vld [vmem:[%s1887_s1 + $0x350] sm:$0xff] }
   0x5   :  { %194 = vmatpush1.msra.mxu0 %v133_v7  ;;  %265 = vmatpush1.msra.mxu1 %v135_v8  ;;  %v118_v13 = vld [vmem:[%s1887_s1 + $0x308] sm:$0xff]  ;;  %v120_v14 = vld [vmem:[%s1887_s1 + $0x318] sm:$0xff]  ;;  %v117_v15 = vld [vmem:[%s1887_s1 + $0x300] sm:$0xff] }
   0x6   :  { %195 = vmatprep.subr.mxu0 %v126_v9  ;;  %266 = vmatprep.subr.mxu1 %v128_v10  ;;  %v119_v16 = vld [vmem:[%s1887_s1 + $0x310] sm:$0xff]  ;;  %v110_v17 = vld [vmem:[%s1887_s1 + $0x2c8] sm:$0xff]  ;;  %v112_v18 = vld [vmem:[%s1887_s1 + $0x2d8] sm:$0xff] }
   0x7   :  { %196 = vmatpush1.msra.mxu0 %v125_v11  ;;  %267 = vmatpush1.msra.mxu1 %v127_v12  ;;  %v109_v19 = vld [vmem:[%s1887_s1 + $0x2c0] sm:$0xff]  ;;  %v111_v20 = vld [vmem:[%s1887_s1 + $0x2d0] sm:$0xff]  ;;  %v102_v21 = vld [vmem:[%s1887_s1 + $0x288] sm:$0xff] }
   0x8   :  { %197 = vmatprep.subr.mxu0 %v118_v13  ;;  %268 = vmatprep.subr.mxu1 %v120_v14  ;;  %v104_v22 = vld [vmem:[%s1887_s1 + $0x298] sm:$0xff]  ;;  %v101_v23 = vld [vmem:[%s1887_s1 + $0x280] sm:$0xff]  ;;  %v103_v24 = vld [vmem:[%s1887_s1 + $0x290] sm:$0xff] }
   0x9   :  { %198 = vmatpush1.msra.mxu0 %v117_v15  ;;  %269 = vmatpush1.msra.mxu1 %v119_v16  ;;  %v94_v25 = vld [vmem:[%s1887_s1 + $0x248] sm:$0xff]  ;;  %v96_v26 = vld [vmem:[%s1887_s1 + $0x258] sm:$0xff]  ;;  %v93_v27 = vld [vmem:[%s1887_s1 + $0x240] sm:$0xff] }
   0xa   :  { %199 = vmatprep.subr.mxu0 %v110_v17  ;;  %270 = vmatprep.subr.mxu1 %v112_v18  ;;  %v95_v28 = vld [vmem:[%s1887_s1 + $0x250] sm:$0xff]  ;;  %v86_v29 = vld [vmem:[%s1887_s1 + $0x208] sm:$0xff]  ;;  %v88_v30 = vld [vmem:[%s1887_s1 + $0x218] sm:$0xff] }
   0xb   :  { %200 = vmatpush1.msra.mxu0 %v109_v19  ;;  %271 = vmatpush1.msra.mxu1 %v111_v20  ;;  %v85_v31 = vld [vmem:[%s1887_s1 + $0x200] sm:$0xff]  ;;  %v87_v32 = vld [vmem:[%s1887_s1 + $0x210] sm:$0xff]  ;;  %v78_v33 = vld [vmem:[%s1887_s1 + $0x1c8] sm:$0xff] }
   0xc   :  { %201 = vmatprep.subr.mxu0 %v102_v21  ;;  %272 = vmatprep.subr.mxu1 %v104_v22  ;;  %v80_v34 = vld [vmem:[%s1887_s1 + $0x1d8] sm:$0xff]  ;;  %v77_v35 = vld [vmem:[%s1887_s1 + $0x1c0] sm:$0xff]  ;;  %v79_v36 = vld [vmem:[%s1887_s1 + $0x1d0] sm:$0xff] }
   0xd   :  { %202 = vmatpush1.msra.mxu0 %v101_v23  ;;  %273 = vmatpush1.msra.mxu1 %v103_v24  ;;  %v70_v37 = vld [vmem:[%s1887_s1 + $0x188] sm:$0xff]  ;;  %v72_v38 = vld [vmem:[%s1887_s1 + $0x198] sm:$0xff]  ;;  %v69_v39 = vld [vmem:[%s1887_s1 + $0x180] sm:$0xff] }
   0xe   :  { %203 = vmatprep.subr.mxu0 %v94_v25  ;;  %274 = vmatprep.subr.mxu1 %v96_v26  ;;  %v71_v40 = vld [vmem:[%s1887_s1 + $0x190] sm:$0xff]  ;;  %v62_v41 = vld [vmem:[%s1887_s1 + $0x148] sm:$0xff]  ;;  %v64_v42 = vld [vmem:[%s1887_s1 + $0x158] sm:$0xff] }
   0xf   :  { %204 = vmatpush1.msra.mxu0 %v93_v27  ;;  %275 = vmatpush1.msra.mxu1 %v95_v28  ;;  %v61_v43 = vld [vmem:[%s1887_s1 + $0x140] sm:$0xff]  ;;  %v63_v44 = vld [vmem:[%s1887_s1 + $0x150] sm:$0xff]  ;;  %v54_v45 = vld [vmem:[%s1887_s1 + $0x108] sm:$0xff] }
  0x10   :  { %205 = vmatprep.subr.mxu0 %v86_v29  ;;  %276 = vmatprep.subr.mxu1 %v88_v30  ;;  %v56_v46 = vld [vmem:[%s1887_s1 + $0x118] sm:$0xff]  ;;  %v53_v47 = vld [vmem:[%s1887_s1 + $0x100] sm:$0xff]  ;;  %v55_v48 = vld [vmem:[%s1887_s1 + $0x110] sm:$0xff] }
  0x11   :  { %206 = vmatpush1.msra.mxu0 %v85_v31  ;;  %277 = vmatpush1.msra.mxu1 %v87_v32  ;;  %v46_v49 = vld [vmem:[%s1887_s1 + $0xc8] sm:$0xff]  ;;  %v48_v50 = vld [vmem:[%s1887_s1 + $0xd8] sm:$0xff]  ;;  %v45_v51 = vld [vmem:[%s1887_s1 + $0xc0] sm:$0xff] }
  0x12   :  { %207 = vmatprep.subr.mxu0 %v78_v33  ;;  %278 = vmatprep.subr.mxu1 %v80_v34  ;;  %v47_v52 = vld [vmem:[%s1887_s1 + $0xd0] sm:$0xff]  ;;  %v38_v53 = vld [vmem:[%s1887_s1 + $0x88] sm:$0xff]  ;;  %v40_v54 = vld [vmem:[%s1887_s1 + $0x98] sm:$0xff] }
  0x13   :  { %208 = vmatpush1.msra.mxu0 %v77_v35  ;;  %279 = vmatpush1.msra.mxu1 %v79_v36  ;;  %v37_v55 = vld [vmem:[%s1887_s1 + $0x80] sm:$0xff]  ;;  %v39_v56 = vld [vmem:[%s1887_s1 + $0x90] sm:$0xff]  ;;  %v30_v57 = vld [vmem:[%s1887_s1 + $0x48] sm:$0xff] }
  0x14   :  { %209 = vmatprep.subr.mxu0 %v70_v37  ;;  %280 = vmatprep.subr.mxu1 %v72_v38  ;;  %v32_v58 = vld [vmem:[%s1887_s1 + $0x58] sm:$0xff]  ;;  %v29_v59 = vld [vmem:[%s1887_s1 + $0x40] sm:$0xff]  ;;  %v31_v60 = vld [vmem:[%s1887_s1 + $0x50] sm:$0xff] }
  0x15   :  { %210 = vmatpush1.msra.mxu0 %v69_v39  ;;  %281 = vmatpush1.msra.mxu1 %v71_v40  ;;  %v22_v61 = vld [vmem:[%s1887_s1 + $0x8] sm:$0xff]  ;;  %v24_v62 = vld [vmem:[%s1887_s1 + $0x18] sm:$0xff]  ;;  %v21_v63 = vld [vmem:[%s1887_s1] sm:$0xff] }
  0x16   :  { %211 = vmatprep.subr.mxu0 %v62_v41  ;;  %282 = vmatprep.subr.mxu1 %v64_v42  ;;  %v23_v0 = vld [vmem:[%s1887_s1 + $0x10] sm:$0xff]  ;;  %v1274_v1 = vld [vmem:[%s1888_s0] sm:$0x3]  ;;  %v146_v2 = vld [vmem:[%s1887_s1 + $0x3e8] sm:$0xff] }
  0x17   :  { %212 = vmatpush1.msra.mxu0 %v61_v43  ;;  %283 = vmatpush1.msra.mxu1 %v63_v44  ;;  %v148_v4 = vld [vmem:[%s1887_s1 + $0x3f8] sm:$0xff]  ;;  %v145_v5 = vld [vmem:[%s1887_s1 + $0x3e0] sm:$0xff]  ;;  %v147_v6 = vld [vmem:[%s1887_s1 + $0x3f0] sm:$0xff] }
  0x18   :  { %213 = vmatprep.subr.mxu0 %v54_v45  ;;  %284 = vmatprep.subr.mxu1 %v56_v46  ;;  %v138_v7 = vld [vmem:[%s1887_s1 + $0x3a8] sm:$0xff]  ;;  %v140_v8 = vld [vmem:[%s1887_s1 + $0x3b8] sm:$0xff]  ;;  %v137_v9 = vld [vmem:[%s1887_s1 + $0x3a0] sm:$0xff] }
  0x19   :  { %214 = vmatpush1.msra.mxu0 %v53_v47  ;;  %285 = vmatpush1.msra.mxu1 %v55_v48  ;;  %v139_v10 = vld [vmem:[%s1887_s1 + $0x3b0] sm:$0xff]  ;;  %v130_v11 = vld [vmem:[%s1887_s1 + $0x368] sm:$0xff]  ;;  %v132_v12 = vld [vmem:[%s1887_s1 + $0x378] sm:$0xff] }
  0x1a   :  { %215 = vmatprep.subr.mxu0 %v46_v49  ;;  %286 = vmatprep.subr.mxu1 %v48_v50  ;;  %v129_v13 = vld [vmem:[%s1887_s1 + $0x360] sm:$0xff]  ;;  %v131_v14 = vld [vmem:[%s1887_s1 + $0x370] sm:$0xff]  ;;  %v122_v15 = vld [vmem:[%s1887_s1 + $0x328] sm:$0xff] }
  0x1b   :  { %216 = vmatpush1.msra.mxu0 %v45_v51  ;;  %287 = vmatpush1.msra.mxu1 %v47_v52  ;;  %v124_v16 = vld [vmem:[%s1887_s1 + $0x338] sm:$0xff]  ;;  %v121_v17 = vld [vmem:[%s1887_s1 + $0x320] sm:$0xff]  ;;  %v123_v18 = vld [vmem:[%s1887_s1 + $0x330] sm:$0xff] }
  0x1c   :  { %217 = vmatprep.subr.mxu0 %v38_v53  ;;  %288 = vmatprep.subr.mxu1 %v40_v54  ;;  %v114_v19 = vld [vmem:[%s1887_s1 + $0x2e8] sm:$0xff]  ;;  %v116_v20 = vld [vmem:[%s1887_s1 + $0x2f8] sm:$0xff]  ;;  %v113_v21 = vld [vmem:[%s1887_s1 + $0x2e0] sm:$0xff] }
  0x1d   :  { %218 = vmatpush1.msra.mxu0 %v37_v55  ;;  %289 = vmatpush1.msra.mxu1 %v39_v56  ;;  %v115_v22 = vld [vmem:[%s1887_s1 + $0x2f0] sm:$0xff]  ;;  %v106_v23 = vld [vmem:[%s1887_s1 + $0x2a8] sm:$0xff]  ;;  %v108_v24 = vld [vmem:[%s1887_s1 + $0x2b8] sm:$0xff] }
  0x1e   :  { %219 = vmatprep.subr.mxu0 %v30_v57  ;;  %290 = vmatprep.subr.mxu1 %v32_v58  ;;  %v105_v25 = vld [vmem:[%s1887_s1 + $0x2a0] sm:$0xff]  ;;  %v107_v26 = vld [vmem:[%s1887_s1 + $0x2b0] sm:$0xff]  ;;  %v98_v27 = vld [vmem:[%s1887_s1 + $0x268] sm:$0xff] }
  0x1f   :  { %220 = vmatpush1.msra.mxu0 %v29_v59  ;;  %291 = vmatpush1.msra.mxu1 %v31_v60  ;;  %v100_v28 = vld [vmem:[%s1887_s1 + $0x278] sm:$0xff]  ;;  %v97_v29 = vld [vmem:[%s1887_s1 + $0x260] sm:$0xff]  ;;  %v99_v30 = vld [vmem:[%s1887_s1 + $0x270] sm:$0xff] }
  0x20   :  { %221 = vmatprep.subr.mxu0 %v22_v61  ;;  %292 = vmatprep.subr.mxu1 %v24_v62  ;;  %v90_v31 = vld [vmem:[%s1887_s1 + $0x228] sm:$0xff]  ;;  %v92_v32 = vld [vmem:[%s1887_s1 + $0x238] sm:$0xff]  ;;  %v89_v33 = vld [vmem:[%s1887_s1 + $0x220] sm:$0xff] }
  0x21   :  { %222 = vmatpush1.msra.mxu0 %v21_v63  ;;  %293 = vmatpush1.msra.mxu1 %v23_v0  ;;  %v91_v34 = vld [vmem:[%s1887_s1 + $0x230] sm:$0xff]  ;;  %v82_v35 = vld [vmem:[%s1887_s1 + $0x1e8] sm:$0xff]  ;;  %v84_v36 = vld [vmem:[%s1887_s1 + $0x1f8] sm:$0xff] }
  0x22   :  { %256 = vmatmul.mubr.f32.vlgmr.msra.gmra.mxu0 %v1274_v1  ;;  %327 = vmatmul.mubr.f32.vlgmr.msra.gmra.mxu1 %v1274_v1  ;;  %v81_v37 = vld [vmem:[%s1887_s1 + $0x1e0] sm:$0xff]  ;;  %v83_v38 = vld [vmem:[%s1887_s1 + $0x1f0] sm:$0xff]  ;;  %v74_v39 = vld [vmem:[%s1887_s1 + $0x1a8] sm:$0xff] }
  0x23   :  { %333 = vmatprep.subr.mxu0 %v146_v2  ;;  %404 = vmatprep.subr.mxu1 %v148_v4  ;;  %v76_v40 = vld [vmem:[%s1887_s1 + $0x1b8] sm:$0xff]  ;;  %v73_v41 = vld [vmem:[%s1887_s1 + $0x1a0] sm:$0xff]  ;;  %v75_v42 = vld [vmem:[%s1887_s1 + $0x1b0] sm:$0xff] }
  0x24   :  { %334 = vmatpush1.msra.mxu0 %v145_v5  ;;  %405 = vmatpush1.msra.mxu1 %v147_v6  ;;  %v66_v43 = vld [vmem:[%s1887_s1 + $0x168] sm:$0xff]  ;;  %v68_v44 = vld [vmem:[%s1887_s1 + $0x178] sm:$0xff]  ;;  %v65_v45 = vld [vmem:[%s1887_s1 + $0x160] sm:$0xff] }
  0x25   :  { %335 = vmatprep.subr.mxu0 %v138_v7  ;;  %406 = vmatprep.subr.mxu1 %v140_v8  ;;  %v67_v46 = vld [vmem:[%s1887_s1 + $0x170] sm:$0xff]  ;;  %v58_v47 = vld [vmem:[%s1887_s1 + $0x128] sm:$0xff]  ;;  %v60_v48 = vld [vmem:[%s1887_s1 + $0x138] sm:$0xff] }
  0x26   :  { %336 = vmatpush1.msra.mxu0 %v137_v9  ;;  %407 = vmatpush1.msra.mxu1 %v139_v10  ;;  %v57_v49 = vld [vmem:[%s1887_s1 + $0x120] sm:$0xff]  ;;  %v59_v50 = vld [vmem:[%s1887_s1 + $0x130] sm:$0xff]  ;;  %v50_v51 = vld [vmem:[%s1887_s1 + $0xe8] sm:$0xff] }
  0x27   :  { %337 = vmatprep.subr.mxu0 %v130_v11  ;;  %408 = vmatprep.subr.mxu1 %v132_v12  ;;  %v52_v52 = vld [vmem:[%s1887_s1 + $0xf8] sm:$0xff]  ;;  %v49_v53 = vld [vmem:[%s1887_s1 + $0xe0] sm:$0xff]  ;;  %v51_v54 = vld [vmem:[%s1887_s1 + $0xf0] sm:$0xff] }
  0x28   :  { %338 = vmatpush1.msra.mxu0 %v129_v13  ;;  %409 = vmatpush1.msra.mxu1 %v131_v14  ;;  %v42_v55 = vld [vmem:[%s1887_s1 + $0xa8] sm:$0xff]  ;;  %v44_v56 = vld [vmem:[%s1887_s1 + $0xb8] sm:$0xff]  ;;  %v41_v57 = vld [vmem:[%s1887_s1 + $0xa0] sm:$0xff] }
  0x29   :  { %339 = vmatprep.subr.mxu0 %v122_v15  ;;  %410 = vmatprep.subr.mxu1 %v124_v16  ;;  %v43_v58 = vld [vmem:[%s1887_s1 + $0xb0] sm:$0xff]  ;;  %v34_v59 = vld [vmem:[%s1887_s1 + $0x68] sm:$0xff]  ;;  %v36_v60 = vld [vmem:[%s1887_s1 + $0x78] sm:$0xff] }
  0x2a   :  { %340 = vmatpush1.msra.mxu0 %v121_v17  ;;  %411 = vmatpush1.msra.mxu1 %v123_v18  ;;  %v33_v61 = vld [vmem:[%s1887_s1 + $0x60] sm:$0xff]  ;;  %v35_v62 = vld [vmem:[%s1887_s1 + $0x70] sm:$0xff]  ;;  %v26_v63 = vld [vmem:[%s1887_s1 + $0x28] sm:$0xff] }
  0x2b   :  { %341 = vmatprep.subr.mxu0 %v114_v19  ;;  %412 = vmatprep.subr.mxu1 %v116_v20  ;;  %v28_v0 = vld [vmem:[%s1887_s1 + $0x38] sm:$0xff]  ;;  %v25_v2 = vld [vmem:[%s1887_s1 + $0x20] sm:$0xff]  ;;  %v27_v4 = vld [vmem:[%s1887_s1 + $0x30] sm:$0xff] }
  0x2c   :  { %342 = vmatpush1.msra.mxu0 %v113_v21  ;;  %413 = vmatpush1.msra.mxu1 %v115_v22  ;;  %v514_v5 = vld [vmem:[%s1889_s3 + $0xf8] sm:$0xff]  ;;  %v513_v9 = vld [vmem:[%s1889_s3 + $0xf0] sm:$0xff]  ;;  %v544_v12 = vld [vmem:[%s1889_s3 + $0x1e8] sm:$0xff] }
  0x2d   :  { %343 = vmatprep.subr.mxu0 %v106_v23  ;;  %414 = vmatprep.subr.mxu1 %v108_v24  ;;  %v546_v6 = vld [vmem:[%s1889_s3 + $0x1f8] sm:$0xff]  ;;  %v497_v10 = vld [vmem:[%s1889_s3 + $0x70] sm:$0xff]  ;;  %v496_v13 = vld [vmem:[%s1889_s3 + $0x68] sm:$0xff] }
  0x2e   :  { %344 = vmatpush1.msra.mxu0 %v105_v25  ;;  %415 = vmatpush1.msra.mxu1 %v107_v26  ;;  %v498_v7 = vld [vmem:[%s1889_s3 + $0x78] sm:$0xff]  ;;  %v529_v11 = vld [vmem:[%s1889_s3 + $0x170] sm:$0xff]  ;;  %v528_v14 = vld [vmem:[%s1889_s3 + $0x168] sm:$0xff] }
  0x2f   :  { %345 = vmatprep.subr.mxu0 %v98_v27  ;;  %416 = vmatprep.subr.mxu1 %v100_v28  ;;  %v530_v8 = vld [vmem:[%s1889_s3 + $0x178] sm:$0xff]  ;;  %v511_v15 = vld [vmem:[%s1889_s3 + $0xe0] sm:$0xff]  ;;  %v509_v23 = vld [vmem:[%s1889_s3 + $0xd0] sm:$0xff] }
  0x30   :  { %346 = vmatpush1.msra.mxu0 %v97_v29  ;;  %417 = vmatpush1.msra.mxu1 %v99_v30  ;;  %v543_v16 = vld [vmem:[%s1889_s3 + $0x1e0] sm:$0xff]  ;;  %v510_v19 = vld [vmem:[%s1889_s3 + $0xd8] sm:$0xff]  ;;  %v541_v24 = vld [vmem:[%s1889_s3 + $0x1d0] sm:$0xff] }
  0x31   :  { %347 = vmatprep.subr.mxu0 %v90_v31  ;;  %418 = vmatprep.subr.mxu1 %v92_v32  ;;  %v495_v17 = vld [vmem:[%s1889_s3 + $0x60] sm:$0xff]  ;;  %v542_v20 = vld [vmem:[%s1889_s3 + $0x1d8] sm:$0xff]  ;;  %v493_v25 = vld [vmem:[%s1889_s3 + $0x50] sm:$0xff] }
  0x32   :  { %348 = vmatpush1.msra.mxu0 %v89_v33  ;;  %419 = vmatpush1.msra.mxu1 %v91_v34  ;;  %v527_v18 = vld [vmem:[%s1889_s3 + $0x160] sm:$0xff]  ;;  %v494_v21 = vld [vmem:[%s1889_s3 + $0x58] sm:$0xff]  ;;  %v525_v26 = vld [vmem:[%s1889_s3 + $0x150] sm:$0xff] }
  0x33   :  { %349 = vmatprep.subr.mxu0 %v82_v35  ;;  %420 = vmatprep.subr.mxu1 %v84_v36  ;;  %v526_v22 = vld [vmem:[%s1889_s3 + $0x158] sm:$0xff]  ;;  %v508_v27 = vld [vmem:[%s1889_s3 + $0xc8] sm:$0xff]  ;;  %v507_v31 = vld [vmem:[%s1889_s3 + $0xc0] sm:$0xff] }
  0x34   :  { %350 = vmatpush1.msra.mxu0 %v81_v37  ;;  %421 = vmatpush1.msra.mxu1 %v83_v38  ;;  %v540_v28 = vld [vmem:[%s1889_s3 + $0x1c8] sm:$0xff]  ;;  %v539_v32 = vld [vmem:[%s1889_s3 + $0x1c0] sm:$0xff]  ;;  %v506_v35 = vld [vmem:[%s1889_s3 + $0xb8] sm:$0xff] }
  0x35   :  { %351 = vmatprep.subr.mxu0 %v74_v39  ;;  %422 = vmatprep.subr.mxu1 %v76_v40  ;;  %v492_v29 = vld [vmem:[%s1889_s3 + $0x48] sm:$0xff]  ;;  %v491_v33 = vld [vmem:[%s1889_s3 + $0x40] sm:$0xff]  ;;  %v538_v36 = vld [vmem:[%s1889_s3 + $0x1b8] sm:$0xff] }
  0x36   :  { %352 = vmatpush1.msra.mxu0 %v73_v41  ;;  %423 = vmatpush1.msra.mxu1 %v75_v42  ;;  %v524_v30 = vld [vmem:[%s1889_s3 + $0x148] sm:$0xff]  ;;  %v523_v34 = vld [vmem:[%s1889_s3 + $0x140] sm:$0xff]  ;;  %v490_v37 = vld [vmem:[%s1889_s3 + $0x38] sm:$0xff] }
  0x37   :  { %353 = vmatprep.subr.mxu0 %v66_v43  ;;  %424 = vmatprep.subr.mxu1 %v68_v44  ;;  %v522_v38 = vld [vmem:[%s1889_s3 + $0x138] sm:$0xff]  ;;  %v505_v39 = vld [vmem:[%s1889_s3 + $0xb0] sm:$0xff]  ;;  %v504_v43 = vld [vmem:[%s1889_s3 + $0xa8] sm:$0xff] }
  0x38   :  { %354 = vmatpush1.msra.mxu0 %v65_v45  ;;  %425 = vmatpush1.msra.mxu1 %v67_v46  ;;  %v537_v40 = vld [vmem:[%s1889_s3 + $0x1b0] sm:$0xff]  ;;  %v536_v44 = vld [vmem:[%s1889_s3 + $0x1a8] sm:$0xff] }
  0x39   :  { %355 = vmatprep.subr.mxu0 %v58_v47  ;;  %426 = vmatprep.subr.mxu1 %v60_v48  ;;  %v489_v41 = vld [vmem:[%s1889_s3 + $0x30] sm:$0xff]  ;;  %v488_v45 = vld [vmem:[%s1889_s3 + $0x28] sm:$0xff]  ;;  %v503_v47 = vld [vmem:[%s1889_s3 + $0xa0] sm:$0xff] }
  0x3a   :  { %356 = vmatpush1.msra.mxu0 %v57_v49  ;;  %427 = vmatpush1.msra.mxu1 %v59_v50  ;;  %v521_v42 = vld [vmem:[%s1889_s3 + $0x130] sm:$0xff]  ;;  %v520_v46 = vld [vmem:[%s1889_s3 + $0x128] sm:$0xff]  ;;  %v535_v48 = vld [vmem:[%s1889_s3 + $0x1a0] sm:$0xff] }
  0x3b   :  { %357 = vmatprep.subr.mxu0 %v50_v51  ;;  %428 = vmatprep.subr.mxu1 %v52_v52  ;;  %v487_v49 = vld [vmem:[%s1889_s3 + $0x20] sm:$0xff]  ;;  %v502_v51 = vld [vmem:[%s1889_s3 + $0x98] sm:$0xff] }
  0x3c   :  { %358 = vmatpush1.msra.mxu0 %v49_v53  ;;  %429 = vmatpush1.msra.mxu1 %v51_v54  ;;  %v519_v50 = vld [vmem:[%s1889_s3 + $0x120] sm:$0xff]  ;;  %v534_v52 = vld [vmem:[%s1889_s3 + $0x198] sm:$0xff] }
  0x3d   :  { %359 = vmatprep.subr.mxu0 %v42_v55  ;;  %430 = vmatprep.subr.mxu1 %v44_v56  ;;  %v486_v53 = vld [vmem:[%s1889_s3 + $0x18] sm:$0xff]  ;;  %v501_v55 = vld [vmem:[%s1889_s3 + $0x90] sm:$0xff] }
  0x3e   :  { %360 = vmatpush1.msra.mxu0 %v41_v57  ;;  %431 = vmatpush1.msra.mxu1 %v43_v58  ;;  %v518_v54 = vld [vmem:[%s1889_s3 + $0x118] sm:$0xff]  ;;  %v533_v56 = vld [vmem:[%s1889_s3 + $0x190] sm:$0xff] }
  0x3f   :  { %361 = vmatprep.subr.mxu0 %v34_v59  ;;  %432 = vmatprep.subr.mxu1 %v36_v60  ;;  %v485_v57 = vld [vmem:[%s1889_s3 + $0x10] sm:$0xff]  ;;  %v500_v59 = vld [vmem:[%s1889_s3 + $0x88] sm:$0xff] }
  0x40   :  { %362 = vmatpush1.msra.mxu0 %v33_v61  ;;  %433 = vmatpush1.msra.mxu1 %v35_v62  ;;  %v517_v58 = vld [vmem:[%s1889_s3 + $0x110] sm:$0xff]  ;;  %v532_v60 = vld [vmem:[%s1889_s3 + $0x188] sm:$0xff] }
  0x41   :  { %363 = vmatprep.subr.mxu0 %v26_v63  ;;  %434 = vmatprep.subr.mxu1 %v28_v0  ;;  %v484_v61 = vld [vmem:[%s1889_s3 + $0x8] sm:$0xff]  ;;  %v499_v63 = vld [vmem:[%s1889_s3 + $0x80] sm:$0xff] }
  0x42   :  { %364 = vmatpush1.msra.mxu0 %v25_v2  ;;  %397 = vmatprep.mubr.f32.mxu0 %v1046_v3  ;;  %v516_v62 = vld [vmem:[%s1889_s3 + $0x108] sm:$0xff]  ;;  %v531_v0 = vld [vmem:[%s1889_s3 + $0x180] sm:$0xff] }
  0x43   :  { %435 = vmatpush1.msra.mxu1 %v27_v4  ;;  %468 = vmatprep.mubr.f32.mxu1 %v1046_v3  ;;  %v545_v3 = vld [vmem:[%s1889_s3 + $0x1f0] sm:$0xff]  ;;  %v483_v2 = vld [vmem:[%s1889_s3] sm:$0xff] }
  0x44   :  { %398 = vmatmul.mubr.f32.vlgmr.msra.gmra.mxu0 %v1274_v1  ;;  %469 = vmatmul.mubr.f32.vlgmr.msra.gmra.mxu1 %v1274_v1  ;;  %v512_v1 = vld [vmem:[%s1889_s3 + $0xe8] sm:$0xff]  ;;  %v515_v4 = vld [vmem:[%s1889_s3 + $0x100] sm:$0xff] }
  0x45   :  { %905 = vmatprep.subr.mxu0 %v514_v5  ;;  %940 = vmatprep.subr.mxu1 %v546_v6  ;;  %v578_v5 = vld [vmem:[%s1889_s3 + $0x2f8] sm:$0xff] }
  0x46   :  { %906 = vmatpush3.msra.mxu0 %v498_v7  ;;  %941 = vmatpush3.msra.mxu1 %v530_v8  ;;  %v610_v6 = vld [vmem:[%s1889_s3 + $0x3f8] sm:$0xff]  ;;  %v151_v7 = vlaneseq }
  0x47   :  { %907 = vmatprep.subr.mxu0 %v513_v9  ;;  %942 = vmatprep.subr.mxu1 %v545_v3 }
  0x48   :  { %908 = vmatpush3.msra.mxu0 %v497_v10  ;;  %943 = vmatpush3.msra.mxu1 %v529_v11  ;;  %v1672_v8 = vshrl.u32 %v151_v7, 7  ;;  %v1679_v10 = vld [vmem:[%s1890_s2] sm:$0xff]  ;;  %v584_v7 = vld [vmem:[%s1889_s3 + $0x328] sm:$0xff] }
  0x49   :  { %909 = vmatprep.subr.mxu0 %v512_v1  ;;  %944 = vmatprep.subr.mxu1 %v544_v12 }
  0x4a   :  { %910 = vmatpush3.msra.mxu0 %v496_v13  ;;  %945 = vmatpush3.msra.mxu1 %v528_v14  ;;  %v161_v9 = vsub.s32 2, %v1672_v8  ;;  %v153_v3 = vsub.s32 0, %v1672_v8  ;;  %v157_v11 = vsub.s32 1, %v1672_v8  ;;  %v165_v1 = vsub.s32 3, %v1672_v8 }
  0x4b   :  { %911 = vmatprep.subr.mxu0 %v511_v15  ;;  %946 = vmatprep.subr.mxu1 %v543_v16 }
  0x4c   :  { %912 = vmatpush3.msra.mxu0 %v495_v17  ;;  %947 = vmatpush3.msra.mxu1 %v527_v18  ;;  %v162_v12 = vrot.slane %v1679_v10, %v161_v9  ;;  %v154_v13 = vrot.slane %v1679_v10, %v153_v3  ;;  %v158_v14 = vrot.slane %v1679_v10, %v157_v11  ;;  %v567_v9 = vld [vmem:[%s1889_s3 + $0x2a0] sm:$0xff]  ;;  %v177_v11 = vsub.s32 6, %v1672_v8 }
  0x4d   :  { %913 = vmatprep.subr.mxu0 %v510_v19  ;;  %948 = vmatprep.subr.mxu1 %v542_v20  ;;  %v166_v15 = vrot.slane %v1679_v10, %v165_v1  ;;  %v599_v3 = vld [vmem:[%s1889_s3 + $0x3a0] sm:$0xff] }
  0x4e   :  { %914 = vmatpush3.msra.mxu0 %v494_v21  ;;  %949 = vmatpush3.msra.mxu1 %v526_v22  ;;  %v551_v1 = vld [vmem:[%s1889_s3 + $0x220] sm:$0xff] }
  0x4f   :  { %915 = vmatprep.subr.mxu0 %v509_v23  ;;  %950 = vmatprep.subr.mxu1 %v541_v24 }
  0x50   :  { %916 = vmatpush3.msra.mxu0 %v493_v25  ;;  %951 = vmatpush3.msra.mxu1 %v525_v26 }
  0x51   :  { %917 = vmatprep.subr.mxu0 %v508_v27  ;;  %952 = vmatprep.subr.mxu1 %v540_v28  ;;  %v562_v28 = vld [vmem:[%s1889_s3 + $0x278] sm:$0xff] }
  0x52   :  { %918 = vmatpush3.msra.mxu0 %v492_v29  ;;  %953 = vmatpush3.msra.mxu1 %v524_v30  ;;  %v594_v29 = vld [vmem:[%s1889_s3 + $0x378] sm:$0xff]  ;;  %v577_v30 = vld [vmem:[%s1889_s3 + $0x2f0] sm:$0xff] }
  0x53   :  { %919 = vmatprep.subr.mxu0 %v507_v31  ;;  %954 = vmatprep.subr.mxu1 %v539_v32  ;;  %v609_v31 = vld [vmem:[%s1889_s3 + $0x3f0] sm:$0xff] }
  0x54   :  { %920 = vmatpush3.msra.mxu0 %v491_v33  ;;  %955 = vmatpush3.msra.mxu1 %v523_v34  ;;  %v561_v32 = vld [vmem:[%s1889_s3 + $0x270] sm:$0xff]  ;;  %v576_v34 = vld [vmem:[%s1889_s3 + $0x2e8] sm:$0xff] }
  0x55   :  { %921 = vmatprep.subr.mxu0 %v506_v35  ;;  %956 = vmatprep.subr.mxu1 %v538_v36  ;;  %v593_v33 = vld [vmem:[%s1889_s3 + $0x370] sm:$0xff]  ;;  %v608_v35 = vld [vmem:[%s1889_s3 + $0x3e8] sm:$0xff] }
  0x56   :  { %922 = vmatpush3.msra.mxu0 %v490_v37  ;;  %957 = vmatpush3.msra.mxu1 %v522_v38  ;;  %v560_v36 = vld [vmem:[%s1889_s3 + $0x268] sm:$0xff]  ;;  %v575_v38 = vld [vmem:[%s1889_s3 + $0x2e0] sm:$0xff] }
  0x57   :  { %923 = vmatprep.subr.mxu0 %v505_v39  ;;  %958 = vmatprep.subr.mxu1 %v537_v40  ;;  %v592_v37 = vld [vmem:[%s1889_s3 + $0x368] sm:$0xff]  ;;  %v607_v39 = vld [vmem:[%s1889_s3 + $0x3e0] sm:$0xff] }
  0x58   :  { %924 = vmatpush3.msra.mxu0 %v489_v41  ;;  %959 = vmatpush3.msra.mxu1 %v521_v42  ;;  %v559_v40 = vld [vmem:[%s1889_s3 + $0x260] sm:$0xff]  ;;  %v574_v42 = vld [vmem:[%s1889_s3 + $0x2d8] sm:$0xff] }
  0x59   :  { %925 = vmatprep.subr.mxu0 %v504_v43  ;;  %960 = vmatprep.subr.mxu1 %v536_v44  ;;  %v591_v41 = vld [vmem:[%s1889_s3 + $0x360] sm:$0xff]  ;;  %v606_v43 = vld [vmem:[%s1889_s3 + $0x3d8] sm:$0xff] }
  0x5a   :  { %926 = vmatpush3.msra.mxu0 %v488_v45  ;;  %961 = vmatpush3.msra.mxu1 %v520_v46  ;;  %v558_v44 = vld [vmem:[%s1889_s3 + $0x258] sm:$0xff]  ;;  %v573_v46 = vld [vmem:[%s1889_s3 + $0x2d0] sm:$0xff] }
  0x5b   :  { %927 = vmatprep.subr.mxu0 %v503_v47  ;;  %962 = vmatprep.subr.mxu1 %v535_v48  ;;  %v590_v45 = vld [vmem:[%s1889_s3 + $0x358] sm:$0xff]  ;;  %v605_v47 = vld [vmem:[%s1889_s3 + $0x3d0] sm:$0xff] }
  0x5c   :  { %928 = vmatpush3.msra.mxu0 %v487_v49  ;;  %963 = vmatpush3.msra.mxu1 %v519_v50  ;;  %v557_v48 = vld [vmem:[%s1889_s3 + $0x250] sm:$0xff]  ;;  %v572_v50 = vld [vmem:[%s1889_s3 + $0x2c8] sm:$0xff] }
  0x5d   :  { %929 = vmatprep.subr.mxu0 %v502_v51  ;;  %964 = vmatprep.subr.mxu1 %v534_v52  ;;  %v589_v49 = vld [vmem:[%s1889_s3 + $0x350] sm:$0xff]  ;;  %v604_v51 = vld [vmem:[%s1889_s3 + $0x3c8] sm:$0xff] }
  0x5e   :  { %930 = vmatpush3.msra.mxu0 %v486_v53  ;;  %965 = vmatpush3.msra.mxu1 %v518_v54  ;;  %v556_v52 = vld [vmem:[%s1889_s3 + $0x248] sm:$0xff]  ;;  %v571_v54 = vld [vmem:[%s1889_s3 + $0x2c0] sm:$0xff] }
  0x5f   :  { %931 = vmatprep.subr.mxu0 %v501_v55  ;;  %966 = vmatprep.subr.mxu1 %v533_v56  ;;  %v588_v53 = vld [vmem:[%s1889_s3 + $0x348] sm:$0xff]  ;;  %v603_v55 = vld [vmem:[%s1889_s3 + $0x3c0] sm:$0xff] }
  0x60   :  { %932 = vmatpush3.msra.mxu0 %v485_v57  ;;  %967 = vmatpush3.msra.mxu1 %v517_v58  ;;  %v555_v56 = vld [vmem:[%s1889_s3 + $0x240] sm:$0xff]  ;;  %v570_v58 = vld [vmem:[%s1889_s3 + $0x2b8] sm:$0xff] }
  0x61   :  { %933 = vmatprep.subr.mxu0 %v500_v59  ;;  %968 = vmatprep.subr.mxu1 %v532_v60  ;;  %v587_v57 = vld [vmem:[%s1889_s3 + $0x340] sm:$0xff]  ;;  %v602_v59 = vld [vmem:[%s1889_s3 + $0x3b8] sm:$0xff] }
  0x62   :  { %934 = vmatpush3.msra.mxu0 %v484_v61  ;;  %969 = vmatpush3.msra.mxu1 %v516_v62  ;;  %v554_v60 = vld [vmem:[%s1889_s3 + $0x238] sm:$0xff]  ;;  %v569_v62 = vld [vmem:[%s1889_s3 + $0x2b0] sm:$0xff] }
  0x63   :  { %935 = vmatprep.subr.mxu0 %v499_v63  ;;  %970 = vmatprep.subr.mxu1 %v531_v0  ;;  %v586_v61 = vld [vmem:[%s1889_s3 + $0x338] sm:$0xff]  ;;  %v601_v63 = vld [vmem:[%s1889_s3 + $0x3b0] sm:$0xff] }
  0x64   :  { %936 = vmatpush3.msra.mxu0 %v483_v2  ;;  %971 = vmatpush3.msra.mxu1 %v515_v4  ;;  %v553_v0 = vld [vmem:[%s1889_s3 + $0x230] sm:$0xff]  ;;  %v568_v4 = vld [vmem:[%s1889_s3 + $0x2a8] sm:$0xff] }
  0x65   :  { %975 = vmatprep.subr.mxu0 %v578_v5  ;;  %1010 = vmatprep.subr.mxu1 %v610_v6  ;;  %v585_v2 = vld [vmem:[%s1889_s3 + $0x330] sm:$0xff]  ;;  %v600_v5 = vld [vmem:[%s1889_s3 + $0x3a8] sm:$0xff] }
  0x66   :  { %v552_v6 = vld [vmem:[%s1889_s3 + $0x228] sm:$0xff] }
  0xe2   :  { %v257_v16 = vpop.f32.mrf.mxu0  ;;  %v328_v17 = vpop.f32.mrf.mxu1 }
  0xe3   :  { %v329_v18 = vadd.f32 %v328_v17, %v162_v12  ;;  %v258_v19 = vadd.f32 %v257_v16, %v154_v13  ;;  %v583_v12 = vld [vmem:[%s1889_s3 + $0x320] sm:$0xff]  ;;  %v169_v13 = vsub.s32 4, %v1672_v8  ;;  %v173_v16 = vsub.s32 5, %v1672_v8 }
  0xe4   :  { %v259_v20 = vpop.f32.mrf.mxu0  ;;  %v330_v21 = vpop.f32.mrf.mxu1  ;;  %v181_v17 = vsub.s32 7, %v1672_v8  ;;  %v597_v8 = vld [vmem:[%s1889_s3 + $0x390] sm:$0xff] }
  0xe5   :  { %v260_v22 = vadd.f32 %v259_v20, %v158_v14  ;;  %v331_v23 = vadd.f32 %v330_v21, %v166_v15  ;;  %v477_v24 = vmax.f32 %v329_v18, 0.0  ;;  %v475_v27 = vmax.f32 %v258_v19, 0.0  ;;  %v566_v14 = vld [vmem:[%s1889_s3 + $0x298] sm:$0xff]  ;;  %v565_v21 = vld [vmem:[%s1889_s3 + $0x290] sm:$0xff] }
  0xe6   :  { %v598_v15 = vld [vmem:[%s1889_s3 + $0x398] sm:$0xff]  ;;  %v178_v20 = vrot.slane %v1679_v10, %v177_v11 }
  0xe7   :  { %v476_v25 = vmax.f32 %v260_v22, 0.0  ;;  %v478_v26 = vmax.f32 %v331_v23, 0.0  ;;  %v550_v18 = vld [vmem:[%s1889_s3 + $0x218] sm:$0xff]  ;;  %v170_v22 = vrot.slane %v1679_v10, %v169_v13  ;;  %v549_v23 = vld [vmem:[%s1889_s3 + $0x210] sm:$0xff] }
  0xe8   :  { %v582_v19 = vld [vmem:[%s1889_s3 + $0x318] sm:$0xff] }
  0xe9   :  { %682 = vmatprep.mubr.f32.mxu0 %v476_v25  ;;  %752 = vmatprep.mubr.f32.mxu1 %v478_v26  ;;  %v174_v25 = vrot.slane %v1679_v10, %v173_v16  ;;  %v182_v26 = vrot.slane %v1679_v10, %v181_v17  ;;  %v580_v10 = vld [vmem:[%s1889_s3 + $0x308] sm:$0xff] }
  0xea   :  { %683 = vmatmul.mubr.f32.vlgmr.msra.gmra.mxu0 %v475_v27  ;;  %753 = vmatmul.mubr.f32.vlgmr.msra.gmra.mxu1 %v477_v24  ;;  %v581_v24 = vld [vmem:[%s1889_s3 + $0x310] sm:$0xff]  ;;  %v564_v27 = vld [vmem:[%s1889_s3 + $0x288] sm:$0xff] }
  0xeb   :  { %976 = vmatpush3.msra.mxu0 %v562_v28  ;;  %1011 = vmatpush3.msra.mxu1 %v594_v29  ;;  %v596_v28 = vld [vmem:[%s1889_s3 + $0x388] sm:$0xff] }
  0xec   :  { %977 = vmatprep.subr.mxu0 %v577_v30  ;;  %1012 = vmatprep.subr.mxu1 %v609_v31  ;;  %v548_v31 = vld [vmem:[%s1889_s3 + $0x208] sm:$0xff] }
  0xed   :  { %978 = vmatpush3.msra.mxu0 %v561_v32  ;;  %1013 = vmatpush3.msra.mxu1 %v593_v33  ;;  %v563_v33 = vld [vmem:[%s1889_s3 + $0x280] sm:$0xff] }
  0xee   :  { %979 = vmatprep.subr.mxu0 %v576_v34  ;;  %1014 = vmatprep.subr.mxu1 %v608_v35  ;;  %v595_v34 = vld [vmem:[%s1889_s3 + $0x380] sm:$0xff] }
  0xef   :  { %980 = vmatpush3.msra.mxu0 %v560_v36  ;;  %1015 = vmatpush3.msra.mxu1 %v592_v37 }
  0xf0   :  { %981 = vmatprep.subr.mxu0 %v575_v38  ;;  %1016 = vmatprep.subr.mxu1 %v607_v39  ;;  %v547_v38 = vld [vmem:[%s1889_s3 + $0x200] sm:$0xff] }
  0xf1   :  { %982 = vmatpush3.msra.mxu0 %v559_v40  ;;  %1017 = vmatpush3.msra.mxu1 %v591_v41  ;;  %v579_v39 = vld [vmem:[%s1889_s3 + $0x300] sm:$0xff] }
  0xf2   :  { %983 = vmatprep.subr.mxu0 %v574_v42  ;;  %1018 = vmatprep.subr.mxu1 %v606_v43 }
  0xf3   :  { %984 = vmatpush3.msra.mxu0 %v558_v44  ;;  %1019 = vmatpush3.msra.mxu1 %v590_v45 }
  0xf4   :  { %985 = vmatprep.subr.mxu0 %v573_v46  ;;  %1020 = vmatprep.subr.mxu1 %v605_v47 }
  0xf5   :  { %986 = vmatpush3.msra.mxu0 %v557_v48  ;;  %1021 = vmatpush3.msra.mxu1 %v589_v49 }
  0xf6   :  { %987 = vmatprep.subr.mxu0 %v572_v50  ;;  %1022 = vmatprep.subr.mxu1 %v604_v51  ;;  %v904_v50 = vld [vmem:[%s1891_s4] ss:$0 sm:$0xff] }
  0xf7   :  { %988 = vmatpush3.msra.mxu0 %v556_v52  ;;  %1023 = vmatpush3.msra.mxu1 %v588_v53 }
  0xf8   :  { %989 = vmatprep.subr.mxu0 %v571_v54  ;;  %1024 = vmatprep.subr.mxu1 %v603_v55 }
  0xf9   :  { %990 = vmatpush3.msra.mxu0 %v555_v56  ;;  %1025 = vmatpush3.msra.mxu1 %v587_v57 }
  0xfa   :  { %991 = vmatprep.subr.mxu0 %v570_v58  ;;  %1026 = vmatprep.subr.mxu1 %v602_v59 }
  0xfb   :  { %992 = vmatpush3.msra.mxu0 %v554_v60  ;;  %1027 = vmatpush3.msra.mxu1 %v586_v61 }
  0xfc   :  { %993 = vmatprep.subr.mxu0 %v569_v62  ;;  %1028 = vmatprep.subr.mxu1 %v601_v63 }
  0xfd   :  { %994 = vmatpush3.msra.mxu0 %v553_v0  ;;  %1029 = vmatpush3.msra.mxu1 %v585_v2 }
  0xfe   :  { %995 = vmatprep.subr.mxu0 %v568_v4  ;;  %1030 = vmatprep.subr.mxu1 %v600_v5 }
  0xff   :  { %996 = vmatpush3.msra.mxu0 %v552_v6  ;;  %1031 = vmatpush3.msra.mxu1 %v584_v7 }
 0x100   :  { %997 = vmatprep.subr.mxu0 %v567_v9  ;;  %1032 = vmatprep.subr.mxu1 %v599_v3 }
 0x101   :  { %998 = vmatpush3.msra.mxu0 %v551_v1  ;;  %1033 = vmatpush3.msra.mxu1 %v583_v12 }
 0x102   :  { %999 = vmatprep.subr.mxu0 %v566_v14  ;;  %1034 = vmatprep.subr.mxu1 %v598_v15 }
 0x103   :  { %1000 = vmatpush3.msra.mxu0 %v550_v18  ;;  %1035 = vmatpush3.msra.mxu1 %v582_v19 }
 0x104   :  { %v399_v29 = vpop.f32.mrf.mxu0  ;;  %v470_v30 = vpop.f32.mrf.mxu1  ;;  %1001 = vmatprep.subr.mxu0 %v565_v21  ;;  %1036 = vmatprep.subr.mxu1 %v597_v8 }
 0x105   :  { %v471_v32 = vadd.f32 %v470_v30, %v178_v20  ;;  %1002 = vmatpush3.msra.mxu0 %v549_v23  ;;  %1037 = vmatpush3.msra.mxu1 %v581_v24  ;;  %v400_v35 = vadd.f32 %v399_v29, %v170_v22 }
 0x106   :  { %v401_v36 = vpop.f32.mrf.mxu0  ;;  %v472_v37 = vpop.f32.mrf.mxu1  ;;  %1003 = vmatprep.subr.mxu0 %v564_v27  ;;  %1038 = vmatprep.subr.mxu1 %v596_v28 }
 0x107   :  { %v402_v40 = vadd.f32 %v401_v36, %v174_v25  ;;  %v473_v41 = vadd.f32 %v472_v37, %v182_v26  ;;  %1004 = vmatpush3.msra.mxu0 %v548_v31  ;;  %1039 = vmatpush3.msra.mxu1 %v580_v10  ;;  %v481_v42 = vmax.f32 %v471_v32, 0.0  ;;  %v479_v45 = vmax.f32 %v400_v35, 0.0 }
 0x108   :  { %1005 = vmatprep.subr.mxu0 %v563_v33  ;;  %1040 = vmatprep.subr.mxu1 %v595_v34 }
 0x109   :  { %v480_v43 = vmax.f32 %v402_v40, 0.0  ;;  %v482_v44 = vmax.f32 %v473_v41, 0.0  ;;  %1006 = vmatpush3.msra.mxu0 %v547_v38  ;;  %1041 = vmatpush3.msra.mxu1 %v579_v39 }
 0x10b   :  { %822 = vmatprep.mubr.f32.mxu0 %v480_v43  ;;  %892 = vmatprep.mubr.f32.mxu1 %v482_v44 }
 0x10c   :  { %823 = vmatmul.mubr.f32.vlgmr.msra.gmra.mxu0 %v479_v45  ;;  %893 = vmatmul.mubr.f32.vlgmr.msra.gmra.mxu1 %v481_v42 }
 0x1aa   :  { %v937_v46 = vpop.f32.mrf.mxu0  ;;  %v972_v48 = vpop.f32.mrf.mxu1 }
 0x1ac   :  { %v938_v47 = vpop.f32.mrf.mxu0  ;;  %v973_v51 = vpop.f32.mrf.mxu1 }
 0x1ad   :  { %v939_v49 = vadd.f32 %v938_v47, %v937_v46  ;;  %v974_v55 = vadd.f32 %v973_v51, %v972_v48 }
 0x1af   :  { %v685_v52 = vadd.f32 %v939_v49, %v904_v50 }
 0x1b1   :  { %v755_v58 = vadd.f32 %v974_v55, %v685_v52 }
 0x1cc   :  { %v1007_v53 = vpop.f32.mrf.mxu0  ;;  %v1042_v54 = vpop.f32.mrf.mxu1 }
 0x1ce   :  { %v1008_v56 = vpop.f32.mrf.mxu0  ;;  %v1043_v57 = vpop.f32.mrf.mxu1 }
 0x1cf   :  { %v1009_v59 = vadd.f32 %v1008_v56, %v1007_v53  ;;  %v1044_v61 = vadd.f32 %v1043_v57, %v1042_v54 }
 0x1d1   :  { %v825_v60 = vadd.f32 %v1009_v59, %v755_v58 }
 0x1d3   :  { %v895_v62 = vadd.f32 %v1044_v61, %v825_v60 }
 0x1d5   :  { %899 = vst.msk [vmem:[%s1892_s5] sm:$0x3] %vm898_vm0, %v895_v62 }

</bundles_post_ra>
